<compile_context>
chip_gen: v6e
topology: v6e:2x2x1
jax: 0.10.0
libtpu: 0.0.40
codegen_flags: <defaults>
</compile_context>

<pallas_src>
import functools

import jax
import jax.numpy as jnp
from jax import lax
from jax.experimental import pallas as pl
from jax.experimental.pallas import tpu as pltpu


def _fused_loss_kernel(x_ref, y_ref, x0_ref, sums_ref, g_ref, acc_ref, *,
                       inv_n, inv_sq):
    b = pl.program_id(0)
    nb = pl.num_programs(0)

    x = x_ref[...].astype(jnp.float32)
    y = y_ref[...].astype(jnp.float32)
    x0 = x0_ref[...].astype(jnp.float32)

    d = x - y
    sse = jnp.sum(d * d)           # partial sum of squared errors for this batch element
    sab = jnp.sum(jnp.abs(x0 - x))  # partial L1 sum for this batch element

    @pl.when(b == 0)
    def _init():
        acc_ref[0] = jnp.float32(0.0)
        acc_ref[1] = jnp.float32(0.0)
        # Gram of x[0, 0]: A^T A via contraction over dim 0 -> fed directly to the MXU
        # (no explicit transpose / XLU vxpose on the critical path).
        g_ref[...] = lax.dot_general(
            x, x,
            dimension_numbers=(((0,), (0,)), ((), ())),
            preferred_element_type=jnp.float32,
        )

    acc_ref[0] += sse
    acc_ref[1] += sab

    @pl.when(b == nb - 1)
    def _finalize():
        # Fold the final scaling into the kernel outputs.
        sums_ref[0] = acc_ref[0] * inv_n    # mean squared error
        sums_ref[1] = acc_ref[1] * inv_sq   # L1 / (256*256)


def _fused_loss(x, y, x0):
    B, C, H, W = x.shape
    assert C == 1, "nuclear norm of x[0].squeeze(0) requires C == 1"
    rows = C * H
    assert B == 1 or rows % 8 == 0, "per-batch row tile must be sublane aligned"
    n_elems = x.size

    # Lane-dense 2D view (free reshape; NCHW is contiguous).
    xf = x.reshape(B * rows, W)
    yf = y.reshape(B * rows, W)
    x0f = x0.reshape(B * rows, W)

    kernel = functools.partial(
        _fused_loss_kernel,
        inv_n=1.0 / float(n_elems),
        inv_sq=1.0 / (256.0 * 256.0),
    )

    # Explicit VMEM budget: 3 double-buffered input tiles + Gram output + headroom,
    # clamped to [32 MiB, 64 MiB] so it is valid on v5e/v6e (128 MiB) and v7x (64 MiB).
    block_bytes = rows * W * 4
    vmem_needed = 3 * 2 * block_bytes + 2 * W * W * 4 + (4 << 20)
    vmem_limit = int(min(64 * 1024 * 1024, max(32 * 1024 * 1024, vmem_needed)))

    sums, g = pl.pallas_call(
        kernel,
        out_shape=(
            jax.ShapeDtypeStruct((2,), jnp.float32),   # [mse, l1/65536]
            jax.ShapeDtypeStruct((W, W), jnp.float32),  # Gram matrix of x[0,0]
        ),
        grid_spec=pltpu.PrefetchScalarGridSpec(
            num_scalar_prefetch=0,
            grid=(B,),
            in_specs=[
                pl.BlockSpec((rows, W), lambda b: (b, 0)),
                pl.BlockSpec((rows, W), lambda b: (b, 0)),
                pl.BlockSpec((rows, W), lambda b: (b, 0)),
            ],
            out_specs=(
                pl.BlockSpec((2,), lambda b: (0,),
                             memory_space=pltpu.MemorySpace.SMEM),
                pl.BlockSpec((W, W), lambda b: (0, 0)),
            ),
            scratch_shapes=[pltpu.SMEM((2,), jnp.float32)],
        ),
        compiler_params=pltpu.CompilerParams(
            dimension_semantics=("arbitrary",),
            vmem_limit_bytes=vmem_limit,
        ),
    )(xf, yf, x0f)
    return sums, g


@jax.jit
def loss_criterion(x, y, x0):
    """Mirrors LossCriterion.forward: returns (loss_all, loss_mse, loss_lowrank, loss_sparse)."""
    sums, g = _fused_loss(x, y, x0)
    loss_mse = sums[0]
    loss_sparse = sums[1]

    # Nuclear norm of x[0].squeeze(0) = sum of singular values of A = sum(sqrt(eig(A^T A))).
    # TODO(synk): SVD/eigendecomposition has no Pallas equivalent; only the Gram matmul
    # runs in the kernel, eigvalsh stays in plain JAX.
    eig = jnp.clip(jnp.linalg.eigvalsh(g), 0.0, None)
    loss_lowrank = jnp.sum(jnp.sqrt(eig)) / jnp.float32(256.0)

    lamda_1 = jnp.float32(1000.0)
    lamda_2 = jnp.float32(0.1)
    lamda_3 = jnp.float32(0.01)
    loss_all = lamda_1 * loss_mse + lamda_2 * loss_lowrank + lamda_3 * loss_sparse
    return loss_all, loss_mse, loss_lowrank, loss_sparse


if __name__ == "__main__":
    key = jax.random.PRNGKey(0)
    k1, k2, k3 = jax.random.split(key, 3)
    B, C, H, W = 2, 1, 16, 16  # small NCHW shapes; C must be 1 (see layout comment)
    x = jax.random.normal(k1, (B, C, H, W), dtype=jnp.float32)
    y = jax.random.normal(k2, (B, C, H, W), dtype=jnp.float32)
    x0 = jax.random.normal(k3, (B, C, H, W), dtype=jnp.float32)

    loss_all, loss_mse, loss_lowrank, loss_sparse = jax.block_until_ready(
        loss_criterion(x, y, x0)
    )

    # Quick sanity check against a pure-JAX reference.
    ref_mse = jnp.mean((x - y) ** 2)
    ref_lowrank = jnp.sum(jnp.linalg.svd(x[0, 0], compute_uv=False)) / 256.0
    ref_sparse = jnp.sum(jnp.abs(x0 - x)) / (256.0 * 256.0)
    ref_all = 1000.0 * ref_mse + 0.1 * ref_lowrank + 0.01 * ref_sparse
    assert jnp.allclose(loss_mse, ref_mse, rtol=1e-5, atol=1e-5)
    assert jnp.allclose(loss_lowrank, ref_lowrank, rtol=1e-4, atol=1e-4)
    assert jnp.allclose(loss_sparse, ref_sparse, rtol=1e-5, atol=1e-5)
    assert jnp.allclose(loss_all, ref_all, rtol=1e-4, atol=1e-4)

    print("KERNEL_OK")
</pallas_src>

<mosaic_0001>
module attributes {stable_mosaic.version = 11 : i64} {
  func.func @_fused_loss_kernel(%arg0: i32, %arg1: memref<16x16xf32, #tpu.memory_space<vmem>>, %arg2: memref<16x16xf32, #tpu.memory_space<vmem>>, %arg3: memref<16x16xf32, #tpu.memory_space<vmem>>, %arg4: memref<2xf32, #tpu.memory_space<smem>>, %arg5: memref<16x16xf32, #tpu.memory_space<vmem>>, %arg6: memref<2xf32, #tpu.memory_space<smem>>) attributes {dimension_semantics = [#tpu.dimension_semantics<arbitrary>], iteration_bounds = array<i64: 2>, scalar_prefetch = 0 : i64, scratch_operands = 1 : i64, tpu.core_type = #tpu.core_type<tc>, window_params = [{transform_indices = @transform_0, window_bounds = array<i64: 16, 16>}, {transform_indices = @transform_1, window_bounds = array<i64: 16, 16>}, {transform_indices = @transform_2, window_bounds = array<i64: 16, 16>}, {transform_indices = @transform_3, window_bounds = array<i64: 2>}, {pipeline_mode = #tpu.pipeline_mode<synchronous>, transform_indices = @transform_4, window_bounds = array<i64: 16, 16>}]} {
    %c0 = arith.constant 0 : index
    %c0_0 = arith.constant 0 : index
    %0 = vector.load %arg1[%c0, %c0_0] : memref<16x16xf32, #tpu.memory_space<vmem>>, vector<16x16xf32>
    %c0_1 = arith.constant 0 : index
    %c0_2 = arith.constant 0 : index
    %1 = vector.load %arg2[%c0_1, %c0_2] : memref<16x16xf32, #tpu.memory_space<vmem>>, vector<16x16xf32>
    %c0_3 = arith.constant 0 : index
    %c0_4 = arith.constant 0 : index
    %2 = vector.load %arg3[%c0_3, %c0_4] : memref<16x16xf32, #tpu.memory_space<vmem>>, vector<16x16xf32>
    %3 = arith.subf %0, %1 : vector<16x16xf32>
    %4 = arith.mulf %3, %3 : vector<16x16xf32>
    %5 = vector.shape_cast %4 : vector<16x16xf32> to vector<1x16x16xf32>
    %cst = arith.constant dense<0.000000e+00> : vector<1xf32>
    %6 = vector.multi_reduction <add>, %5, %cst [1, 2] : vector<1x16x16xf32> to vector<1xf32>
    %7 = vector.shape_cast %6 : vector<1xf32> to vector<1x1x1xf32>
    %8 = vector.extract %7[0, 0, 0] : f32 from vector<1x1x1xf32>
    %9 = arith.subf %2, %0 : vector<16x16xf32>
    %10 = math.absf %9 : vector<16x16xf32>
    %11 = vector.shape_cast %10 : vector<16x16xf32> to vector<1x16x16xf32>
    %cst_5 = arith.constant dense<0.000000e+00> : vector<1xf32>
    %12 = vector.multi_reduction <add>, %11, %cst_5 [1, 2] : vector<1x16x16xf32> to vector<1xf32>
    %13 = vector.shape_cast %12 : vector<1xf32> to vector<1x1x1xf32>
    %14 = vector.extract %13[0, 0, 0] : f32 from vector<1x1x1xf32>
    %c0_i32 = arith.constant 0 : i32
    %15 = arith.cmpi eq, %arg0, %c0_i32 : i32
    %16 = arith.extui %15 : i1 to i32
    %c0_i32_6 = arith.constant 0 : i32
    %17 = arith.cmpi ne, %16, %c0_i32_6 : i32
    scf.if %17 {
      %cst_11 = arith.constant 0.000000e+00 : f32
      %c0_12 = arith.constant 0 : index
      %27 = memref.load %arg6[%c0_12] : memref<2xf32, #tpu.memory_space<smem>>
      memref.store %cst_11, %arg6[%c0_12] : memref<2xf32, #tpu.memory_space<smem>>
      %cst_13 = arith.constant 0.000000e+00 : f32
      %c1_14 = arith.constant 1 : index
      %28 = memref.load %arg6[%c1_14] : memref<2xf32, #tpu.memory_space<smem>>
      memref.store %cst_13, %arg6[%c1_14] : memref<2xf32, #tpu.memory_space<smem>>
      %cst_15 = arith.constant dense<0.000000e+00> : vector<16x16xf32>
      %29 = tpu.matmul %0, %0, %cst_15 {dimension_numbers = #tpu.dot_dimension_numbers<[0], [0], [1], [1], [0, 1, 1, 1], [], []>} : vector<16x16xf32>, vector<16x16xf32>, vector<16x16xf32> -> vector<16x16xf32>
      %c0_16 = arith.constant 0 : index
      %c0_17 = arith.constant 0 : index
      %30 = vector.load %arg5[%c0_16, %c0_17] : memref<16x16xf32, #tpu.memory_space<vmem>>, vector<16x16xf32>
      tpu.vector_store %arg5[%c0_16, %c0_17], %29 {strides = array<i32>} : memref<16x16xf32, #tpu.memory_space<vmem>>, vector<16x16xf32>,
    } else {
    }
    %c0_7 = arith.constant 0 : index
    %18 = memref.load %arg6[%c0_7] : memref<2xf32, #tpu.memory_space<smem>>
    %19 = arith.addf %18, %8 : f32
    %c0_8 = arith.constant 0 : index
    %20 = memref.load %arg6[%c0_8] : memref<2xf32, #tpu.memory_space<smem>>
    memref.store %19, %arg6[%c0_8] : memref<2xf32, #tpu.memory_space<smem>>
    %c1 = arith.constant 1 : index
    %21 = memref.load %arg6[%c1] : memref<2xf32, #tpu.memory_space<smem>>
    %22 = arith.addf %21, %14 : f32
    %c1_9 = arith.constant 1 : index
    %23 = memref.load %arg6[%c1_9] : memref<2xf32, #tpu.memory_space<smem>>
    memref.store %22, %arg6[%c1_9] : memref<2xf32, #tpu.memory_space<smem>>
    %c1_i32 = arith.constant 1 : i32
    %24 = arith.cmpi eq, %arg0, %c1_i32 : i32
    %25 = arith.extui %24 : i1 to i32
    %c0_i32_10 = arith.constant 0 : i32
    %26 = arith.cmpi ne, %25, %c0_i32_10 : i32
    scf.if %26 {
      %c0_11 = arith.constant 0 : index
      %27 = memref.load %arg6[%c0_11] : memref<2xf32, #tpu.memory_space<smem>>
      %cst_12 = arith.constant 0.001953125 : f32
      %28 = arith.mulf %27, %cst_12 : f32
      %c0_13 = arith.constant 0 : index
      %29 = memref.load %arg4[%c0_13] : memref<2xf32, #tpu.memory_space<smem>>
      memref.store %28, %arg4[%c0_13] : memref<2xf32, #tpu.memory_space<smem>>
      %c1_14 = arith.constant 1 : index
      %30 = memref.load %arg6[%c1_14] : memref<2xf32, #tpu.memory_space<smem>>
      %cst_15 = arith.constant 1.52587891E-5 : f32
      %31 = arith.mulf %30, %cst_15 : f32
      %c1_16 = arith.constant 1 : index
      %32 = memref.load %arg4[%c1_16] : memref<2xf32, #tpu.memory_space<smem>>
      memref.store %31, %arg4[%c1_16] : memref<2xf32, #tpu.memory_space<smem>>
    } else {
    }
    return
  }
  func.func @transform_0(%arg0: i32) -> (i32, i32) {
    %c0_i32 = arith.constant 0 : i32
    %c0_i32_0 = arith.constant 0 : i32
    return %arg0, %c0_i32 : i32, i32
  }
  func.func @transform_1(%arg0: i32) -> (i32, i32) {
    %c0_i32 = arith.constant 0 : i32
    %c0_i32_0 = arith.constant 0 : i32
    return %arg0, %c0_i32 : i32, i32
  }
  func.func @transform_2(%arg0: i32) -> (i32, i32) {
    %c0_i32 = arith.constant 0 : i32
    %c0_i32_0 = arith.constant 0 : i32
    return %arg0, %c0_i32 : i32, i32
  }
  func.func @transform_3(%arg0: i32) -> i32 {
    %c0_i32 = arith.constant 0 : i32
    %c0_i32_0 = arith.constant 0 : i32
    return %c0_i32 : i32
  }
  func.func @transform_4(%arg0: i32) -> (i32, i32) {
    %c0_i32 = arith.constant 0 : i32
    %c0_i32_0 = arith.constant 0 : i32
    %c0_i32_1 = arith.constant 0 : i32
    return %c0_i32, %c0_i32_0 : i32, i32
  }
}

</mosaic_0001>

<bundles_post_ra>
// kernel: custom-call.3
= control target key start
LH: loop header
LB: loop body
LE: loop exit
PB: predicated region body
PF: predicated region fallthrough
CT: control target
= control target key end

     0   :  { %11 = vsyncpa [#allocation9], 0  ;;  %s2138_s0 = inlined_call_operand.vmem [shape: f32[8,8], index: 0, kind: input, shape index: {}]   ;;  %s2139_s1 = inlined_call_operand.vmem [shape: f32[8,8], index: 1, kind: input, shape index: {}]   ;;  %s2140_s2 = inlined_call_operand.vmem [shape: f32[8,8], index: 2, kind: input, shape index: {}]   ;;  %s2141_s3 = inlined_call_operand.vmem [shape: f32[8,8], index: 3, kind: input, shape index: {}]   ;;  %s2142_s4 = inlined_call_operand.vmem [shape: f32[8], index: 4, kind: output, shape index: {0}]   ;;  %s2143_s5 = inlined_call_operand.vmem [shape: f32[8], index: 5, kind: output, shape index: {1}]   ;;  %s2144_s6 = inlined_call_operand.hbm [shape: f32[8,8], index: 6, kind: output, shape index: {2}]   ;;  %s2145_s7 = inlined_call_operand.hbm [shape: f32[8,8], index: 7, kind: output, shape index: {3}]   ;;  %s2146_s8 = inlined_call_operand.hbm [shape: f32[8,8], index: 8, kind: output, shape index: {4}]   ;;  %s2147_s9 = inlined_call_operand.hbm [shape: f32[8,8], index: 9, kind: output, shape index: {5}]  }
   0x1   :  { %12 = vsyncpa [#allocation11], 0 }
   0x2   :  { %13 = vsyncpa [#allocation14], 0  ;;  %s1817_s30 = smov [#allocation0]   ;;  %s1821_s12 = smov %s2138_s0  }
   0x3 LB: > { %v61_v0 = vld [vmem:[%s1823_s12] sm:$0xff]  ;;  %s63_s12 = scalar_lea.vmem %s1823_s12, 8   ;;  %s1823_s12 = sphi %s1821_s12, %s63_s12   ;;  %s1819_s30 = sphi %s1817_s30, %s64_s30  }
   0x4   : > { %62 = vst [vmem:[%s1819_s30] sm:$0xff] %v61_v0  ;;  %s64_s30 = scalar_lea.vmem %s1819_s30, 8   ;;  %p58_p0 = scmp.gt.s32.totalorder %s63_s12, %s2138_s0 }
   0x5   :  { %s1825_s15 = smov (%p58_p0), [#allocation1]   ;;  %s1829_s18 = smov (%p58_p0), %s2139_s1  }
   0x6   :  { %60 = sbr.rel (!%p58_p0) target bundleno = 3 (0x3), region = 242 }
   0xb LB: > { %v124_v1 = vld [vmem:[%s1831_s18] sm:$0xff]  ;;  %s126_s18 = scalar_lea.vmem %s1831_s18, 8   ;;  %s1831_s18 = sphi %s1829_s18, %s126_s18   ;;  %s1827_s15 = sphi %s1825_s15, %s127_s15  }
   0xc   : > { %125 = vst [vmem:[%s1827_s15] sm:$0xff] %v124_v1  ;;  %s127_s15 = scalar_lea.vmem %s1827_s15, 8   ;;  %p121_p1 = scmp.gt.s32.totalorder %s126_s18, %s2139_s1 }
   0xd   :  { %s1833_s0 = smov (%p121_p1), [#allocation2]   ;;  %s1837_s23 = smov (%p121_p1), %s2140_s2  }
   0xe   :  { %123 = sbr.rel (!%p121_p1) target bundleno = 11 (0xb), region = 264 }
  0x13 LB: > { %v187_v2 = vld [vmem:[%s1839_s23] sm:$0xff]  ;;  %s189_s23 = scalar_lea.vmem %s1839_s23, 8   ;;  %s1839_s23 = sphi %s1837_s23, %s189_s23   ;;  %s1835_s0 = sphi %s1833_s0, %s190_s0  }
  0x14   : > { %188 = vst [vmem:[%s1835_s0] sm:$0xff] %v187_v2  ;;  %s190_s0 = scalar_lea.vmem %s1835_s0, 8   ;;  %p184_p2 = scmp.gt.s32.totalorder %s189_s23, %s2140_s2 }
  0x15   :  { %s1841_s1 = smov (%p184_p2), [#allocation3]   ;;  %s1845_s28 = smov (%p184_p2), %s2141_s3  }
  0x16   :  { %186 = sbr.rel (!%p184_p2) target bundleno = 19 (0x13), region = 286 }
  0x1b LB: > { %v250_v3 = vld [vmem:[%s1847_s28] sm:$0xff]  ;;  %s252_s28 = scalar_lea.vmem %s1847_s28, 8   ;;  %s1847_s28 = sphi %s1845_s28, %s252_s28   ;;  %s1843_s1 = sphi %s1841_s1, %s253_s1  }
  0x1c   : > { %251 = vst [vmem:[%s1843_s1] sm:$0xff] %v250_v3  ;;  %s253_s1 = scalar_lea.vmem %s1843_s1, 8   ;;  %p247_p3 = scmp.gt.s32.totalorder %s252_s28, %s2141_s3 }
  0x1d   :  { %s266_s2 = smov (%p247_p3), [#allocation15]  ;;  %v267_v4 = vld [vmem:[#allocation0] sm:$0xff] (%p247_p3)  ;;  %s269_s10 = smov (%p247_p3), [#allocation16]  ;;  %v270_v5 = vld [vmem:[#allocation1] sm:$0xff] (%p247_p3)  ;;  %v273_v6 = vld [vmem:[#allocation2] sm:$0xff] (%p247_p3)  ;;  %v283_v7 = vlaneseq (%p247_p3)  ;;  %v1857_v9 = vmov (%p247_p3), 0.0  }
  0x1e   :  { %249 = sbr.rel (!%p247_p3) target bundleno = 27 (0x1b), region = 308  ;;  %268 = vst [vmem:[%s266_s2] sm:$0xff] (%p247_p3), %v267_v4  ;;  %271 = vst [vmem:[%s269_s10] sm:$0xff] (%p247_p3), %v270_v5  ;;  %s272_s11 = smov (%p247_p3), [#allocation17] }
  0x1f   :  { %s275_s12 = smov (%p247_p3), [#allocation18]  ;;  %278 = vst [vmem:[#allocation8] sm:$0xff] (%p247_p3), %v1857_v9  ;;  %279 = vst [vmem:[#allocation10] sm:$0xff] (%p247_p3), %v1857_v9  ;;  %v1938_v10 = vand.u32 (%p247_p3), 127, %v283_v7  ;;  %v1940_v11 = vshrl.u32 (%p247_p3), %v283_v7, 7  ;;  %s282_s3 = smov (%p247_p3), [#allocation8] }
  0x20   :  { %280 = vst [vmem:[#allocation12] sm:$0xff] (%p247_p3), %v1857_v9  ;;  %281 = vst [vmem:[#allocation13] sm:$0xff] (%p247_p3), %v1857_v9  ;;  %s295_s13 = smov (%p247_p3), [#allocation13]  ;;  %s1189_s14 = smov (%p247_p3), [#allocation15] }
  0x21   :  { %274 = vst [vmem:[%s272_s11] sm:$0xff] (%p247_p3), %v273_v6  ;;  %v285_v10 = vmov (%p247_p3), %v1938_v10  ;;  %v288_v11 = vmov (%p247_p3), %v1940_v11  ;;  %vm1193_vm2 = vcmp.lt.s32.totalorder (%p247_p3), %v1938_v10, 8  ;;  %s1206_s15 = smov (%p247_p3), [#allocation16]  ;;  %s1223_s16 = smov (%p247_p3), [#allocation17] }
  0x22   :  { %v298_v10 = vmov (%p247_p3), %v1938_v10  ;;  %v301_v11 = vmov (%p247_p3), %v1940_v11  ;;  %vm292_vm0 = vcmp.eq.s32.totalorder (%p247_p3), %v288_v11, %v285_v10  ;;  %s1240_s17 = smov (%p247_p3), [#allocation18] }
  0x23   :  { %v276_v8 = vld [vmem:[#allocation3] sm:$0xff]  ;;  %vm305_vm1 = vcmp.eq.s32.totalorder %v301_v11, %v298_v10  ;;  %v1185_v10 = vmov %v1938_v10  ;;  %v1188_v11 = vmov %v1940_v11 }
  0x24   :  { %277 = vst [vmem:[%s275_s12] sm:$0xff] %v276_v8  ;;  %vm1198_vm3 = vcmp.eq.s32.totalorder %v1188_v11, %v1185_v10  ;;  %v1236_v10 = vmov %v1938_v10  ;;  %v1205_v11 = vmov %v1940_v11 }
  0x25   :  { %v1195_v16 = vld [vmem:[%s1189_s14] sm:$0xff]  ;;  %v1202_v10 = vmov %v1938_v10  ;;  %v1239_v11 = vmov %v1940_v11 }
  0x26   :  { %v289_v12 = vld [vmem:[%s282_s3] sm:$0xff]  ;;  %v1196_v18 = vsel %vm1193_vm2, %v1195_v16, 0.0  ;;  %v1219_v10 = vmov %v1938_v10  ;;  %v1222_v11 = vmov %v1940_v11  ;;  %vm1249_vm4 = vcmp.eq.s32.totalorder %v1239_v11, %v1236_v10 }
  0x27   :  { %v302_v13 = vld [vmem:[%s295_s13] sm:$0xff]  ;;  %v293_v14 = vsel %vm292_vm0, 1.0, %v289_v12  ;;  %v1197_v22 = vmul.f32 %v1196_v18, %v1196_v18 }
  0x28   :  { %v306_v15 = vsel %vm305_vm1, 1.0, %v302_v13  ;;  %294 = vst [vmem:[%s282_s3] sm:$0xff] %v293_v14  ;;  %v1212_v17 = vld [vmem:[%s1206_s15] sm:$0xff] }
  0x29   :  { %307 = vst [vmem:[%s295_s13] sm:$0xff] %v306_v15  ;;  %v1213_v19 = vsel %vm1193_vm2, %v1212_v17, 0.0  ;;  %v1229_v20 = vld [vmem:[%s1223_s16] sm:$0xff]  ;;  %v1199_v29 = vsel %vm1198_vm3, 0.0, %v1197_v22 }
  0x2a   :  { %v1214_v23 = vmul.f32 %v1213_v19, %v1213_v19  ;;  %v1230_v24 = vsel %vm1193_vm2, %v1229_v20, 0.0 }
  0x2b   :  { %v1246_v21 = vld [vmem:[%s1240_s17] sm:$0xff]  ;;  %v1231_v26 = vmul.f32 %v1230_v24, %v1230_v24 }
  0x2c   :  { %v1247_v25 = vsel %vm1193_vm2, %v1246_v21, 0.0  ;;  %v1216_v27 = vadd.f32 %v1214_v23, %v1197_v22  ;;  %v1215_v30 = vadd.f32 %v1214_v23, %v1199_v29 }
  0x2d   :  { %v1248_v28 = vmul.f32 %v1247_v25, %v1247_v25 }
  0x2e   :  { %v1233_v31 = vadd.f32 %v1231_v26, %v1216_v27  ;;  %v1232_v32 = vadd.f32 %v1231_v26, %v1215_v30 }
  0x2f   :  { %v1250_v33 = vsel %vm1249_vm4, 0.0, %v1248_v28 }
  0x30   :  { %v1252_v34 = vadd.f32 %v1248_v28, %v1233_v31  ;;  %v1251_v35 = vadd.f32 %v1250_v33, %v1232_v32 }
  0x32   :  { %1253 = vadd.xlane.f32.xlu0 %v1252_v34 }
  0x36   :  { %1261 = vadd.xlane.f32.xlu0 %v1251_v35 }
  0xbb   :  { %v1254_v36 = vpop.xlane.xlu0 %1253 }
  0xbc   :  { %v1255_v37 = vrot.slane %v1254_v36, 4 }
  0xbe   :  { %v1256_v38 = vadd.f32 %v1255_v37, %v1254_v36 }
  0xbf   :  { %v1262_v39 = vpop.xlane.xlu0 %1261 }
  0xc0   :  { %v1257_v40 = vrot.slane %v1256_v38, 2  ;;  %v1263_v41 = vrot.slane %v1262_v39, 4 }
  0xc2   :  { %v1264_v42 = vadd.f32 %v1263_v41, %v1262_v39  ;;  %v1258_v43 = vadd.f32 %v1257_v40, %v1256_v38 }
  0xc4   :  { %v1265_v44 = vrot.slane %v1264_v42, 2  ;;  %v1259_v46 = vrot.slane %v1258_v43, 1 }
  0xc6   :  { %v1266_v45 = vadd.f32 %v1265_v44, %v1264_v42  ;;  %v1260_v49 = vadd.f32 %v1259_v46, %v1258_v43 }
  0xc8   :  { %v1267_v47 = vrot.slane %v1266_v45, 1 }
  0xca   :  { %v1268_v48 = vadd.f32 %v1267_v47, %v1266_v45 }
  0xcc   :  { %1348 = vpush %v1268_v48 }
  0xcd   :  { %1350 = vpush %v1260_v49 }
  0xfd   :  { %s1349_s18 = spop %1348 }
  0xfe   :  { %s1351_s19 = spop %1350 }
  0xff   :  { %s1271_s20 = smul.f32 1e-10, %s1351_s19 }
 0x101   :  { %p1272_p4 = scmp.le.f32.partialorder %s1349_s18, %s1271_s20 }
 0x102   :  { %s1964_s0 = smov (!%p1272_p4), 0  }
 0x103   :  { %1275 = sbr.rel (%p1272_p4) target bundleno = 941 (0x3ad), region = 324 }
 0x108 LB: > { %s1969_s21 = smov 0   ;;  %s1851_s0 = sphi %s1964_s0, %s2148_s0  }
 0x109 LB: >> { %s412_s22 = smov [#allocation15]  ;;  %v416_v10 = vmov %v1938_v10  ;;  %v419_v11 = vmov %v1940_v11  ;;  %s432_s23 = smov [#allocation16]  ;;  %vm735_vm14 = vcmp.eq.s32.totalorder %v1940_v11, 0  ;;  %vm747_vm15 = vcmp.eq.s32.totalorder %v1940_v11, 7  ;;  %s1855_s21 = sphi %s1969_s21, %s411_s21  }
 0x10a   : >> { %v436_v10 = vmov %v1938_v10  ;;  %v439_v11 = vmov %v1940_v11  ;;  %v420_v50 = vld [vmem:[%s412_s22] sm:$0xff]  ;;  %vm423_vm5 = vcmp.eq.s32.totalorder %v419_v11, %v416_v10  ;;  %s452_s24 = smov [#allocation18]  ;;  %s413_s25 = smov [#allocation19] }
 0x10b   : >> { %vm443_vm6 = vcmp.eq.s32.totalorder %v439_v11, %v436_v10  ;;  %v456_v10 = vmov %v1938_v10  ;;  %v459_v11 = vmov %v1940_v11  ;;  %v424_v51 = vsel %vm423_vm5, %v420_v50, 0.0  ;;  %v440_v52 = vld [vmem:[%s432_s23] sm:$0xff]  ;;  %s433_s1 = smov [#allocation20]  ;;  %s453_s26 = smov [#allocation21] }
 0x10c   : >> { %vm463_vm7 = vcmp.eq.s32.totalorder %v459_v11, %v456_v10  ;;  %v425_v53 = vrot.slane %v424_v51, 4  ;;  %v444_v54 = vsel %vm443_vm6, %v440_v52, 0.0  ;;  %v460_v55 = vld [vmem:[%s452_s24] sm:$0xff]  ;;  %s476_s27 = smov [#allocation20]  ;;  %s474_s28 = smov [#allocation19]  ;;  %v525_v10 = vmov %v1938_v10 }
 0x10d   : >> { %v445_v56 = vrot.slane %v444_v54, 4  ;;  %v464_v57 = vsel %vm463_vm7, %v460_v55, 0.0  ;;  %s478_s29 = smov [#allocation21]  ;;  %s513_s30 = smov [#allocation22]  ;;  %v528_v11 = vmov %v1940_v11  ;;  %v540_v10 = vmov %v1938_v10 }
 0x10e   : >> { %v426_v58 = vadd.f32 %v425_v53, %v424_v51  ;;  %v465_v59 = vrot.slane %v464_v57, 4  ;;  %s515_s2 = smov [#allocation23]  ;;  %s472_s10 = smov [#allocation24]  ;;  %v543_v11 = vmov %v1940_v11  ;;  %vm530_vm12 = vcmp.eq.s32.totalorder %v528_v11, %v525_v10 }
 0x10f   : >> { %v446_v60 = vadd.f32 %v445_v56, %v444_v54  ;;  %s473_s11 = smov [#allocation25]  ;;  %s517_s10 = smov %s472_s10  ;;  %vm545_vm13 = vcmp.eq.s32.totalorder %v543_v11, %v540_v10  ;;  %v638_v10 = vmov %v1938_v10  ;;  %v641_v11 = vmov %v1940_v11 }
 0x110   : >> { %v427_v61 = vrot.slane %v426_v58, 2  ;;  %v466_v62 = vadd.f32 %v465_v59, %v464_v57  ;;  %s519_s11 = smov %s473_s11  ;;  %s521_s12 = smov [#allocation24]  ;;  %v611_v10 = vmov %v1938_v10  ;;  %v614_v11 = vmov %v1940_v11 }
 0x111   : >> { %v447_v63 = vrot.slane %v446_v60, 2  ;;  %s536_s3 = smov [#allocation25]  ;;  %s534_s13 = smov [#allocation26]  ;;  %v652_v10 = vmov %v1938_v10  ;;  %v655_v11 = vmov %v1940_v11  ;;  %vm645_vm0 = vcmp.eq.s32.totalorder %v641_v11, %v638_v10 }
 0x112   : >> { %v428_v0 = vadd.f32 %v427_v61, %v426_v58  ;;  %v467_v1 = vrot.slane %v466_v62, 2  ;;  %s551_s14 = smov [#allocation26]  ;;  %s1984_s15 = smov [#allocation15]  ;;  %v625_v10 = vmov %v1938_v10  ;;  %v628_v11 = vmov %v1940_v11 }
 0x113   : >> { %v448_v2 = vadd.f32 %v447_v63, %v446_v60  ;;  %s549_s16 = smov [#allocation27]  ;;  %s1986_s17 = smov [#allocation16]  ;;  %v559_v49 = vld [vmem:[%s1984_s15] sm:$0xff]  ;;  %vm619_vm1 = vcmp.eq.s32.totalorder %v614_v11, %v611_v10  ;;  %vm660_vm3 = vcmp.eq.s32.totalorder %v655_v11, %v652_v10  ;;  %vm632_vm4 = vcmp.eq.s32.totalorder %v628_v11, %v625_v10 }
 0x114   : >> { %v429_v3 = vrot.slane %v428_v0, 1  ;;  %v468_v4 = vadd.f32 %v467_v1, %v466_v62  ;;  %s1988_s18 = smov [#allocation18]  ;;  %s775_s19 = smov [#allocation26]  ;;  %v560_v50 = vld [vmem:[%s1986_s17] sm:$0xff]  ;;  %vm674_vm5 = vcmp.eq.s32.totalorder %v1938_v10, 0  ;;  %vm678_vm6 = vcmp.eq.s32.totalorder %v1938_v10, 1 }
 0x115   : >> { %v449_v5 = vrot.slane %v448_v2, 1  ;;  %s1990_s20 = smov [#allocation8]  ;;  %s1992_s22 = smov [#allocation10]  ;;  %v562_v51 = vld [vmem:[%s1988_s18] sm:$0xff]  ;;  %vm691_vm7 = vcmp.eq.s32.totalorder %v1938_v10, 7 }
 0x116   : >> { %v430_v6 = vadd.f32 %v429_v3, %v428_v0  ;;  %v469_v7 = vrot.slane %v468_v4, 1  ;;  %s1994_s23 = smov [#allocation12]  ;;  %s1997_s24 = smov [#allocation13]  ;;  %v783_v52 = vld [vmem:[%s1990_s20] sm:$0xff] }
 0x117   : >> { %v450_v8 = vadd.f32 %v449_v5, %v448_v2  ;;  %v784_v53 = vld [vmem:[%s1992_s22] sm:$0xff]  ;;  %s411_s21 = sadd.s32 1, %s1855_s21  }
 0x118   : >> { %431 = vst [vmem:[%s413_s25] sm:$0x1] %v430_v6  ;;  %v470_v9 = vadd.f32 %v469_v7, %v468_v4  ;;  %s1999_s25 = smov [#allocation17]  ;;  %v785_v56 = vld [vmem:[%s1994_s23] sm:$0xff]  ;;  %p408_p5 = scmp.ge.s32.totalorder %s411_s21, 15  }
 0x119   : >> { %451 = vst [vmem:[%s433_s1] sm:$0x1] %v450_v8  ;;  %v786_v57 = vld [vmem:[%s1997_s24] sm:$0xff]  ;;  %s553_s1 = smov [#allocation27]  ;;  %v312_v10 = vmov (%p408_p5), %v1938_v10  ;;  %v315_v11 = vmov (%p408_p5), %v1940_v11 }
 0x11a   : >> { %471 = vst [vmem:[%s453_s26] sm:$0x1] %v470_v9  ;;  %s777_s26 = smov [#allocation27]  ;;  %v561_v58 = vld [vmem:[%s1999_s25] sm:$0xff]  ;;  %v365_v10 = vmov (%p408_p5), %v1938_v10 }
 0x11f   : >> { %v475_v14 = vld [vmem:[%s474_s28] sm:$0xff]  ;;  %s804_s28 = smov [#allocation12] }
 0x120   : >> { %v477_v12 = vld [vmem:[%s476_s27] sm:$0xff]  ;;  %v498_v29 = vand.u32 2147483647, %v475_v14  ;;  %s803_s27 = smov [#allocation8] }
 0x121   : >> { %v481_v13 = vmul.f32 2.0, %v477_v12  ;;  %v479_v15 = vld [vmem:[%s478_s29] sm:$0xff]  ;;  %v499_v32 = vand.u32 2147483647, %v477_v12  ;;  %s579_s29 = smov [#allocation24] }
 0x122   : >> { %v480_v16 = vsub.f32 %v479_v15, %v475_v14  ;;  %v500_v30 = vand.u32 2147483647, %v479_v15 }
 0x123   : >> { %1603 = vrcp.f32 %v481_v13 }
 0x124   : >> { %v501_v31 = vmin.f32 %v498_v29, %v500_v30 }
 0x126   : >> { %v502_v33 = vmul.f32 1.1920929e-08, %v501_v31 }
 0x128   : >> { %vm503_vm11 = vcmp.le.f32.partialorder %v499_v32, %v502_v33 }
 0x130   : >> { %v1604_v17 = vpop.eup %1603 }
 0x131   : >> { %v483_v18 = vmul.f32 %v1604_v17, %v480_v16 }
 0x133   : >> { %v485_v19 = vmul.f32 %v483_v18, %v483_v18  ;;  %vm484_vm10 = vcmp.ge.f32.partialorder %v483_v18, 0.0 }
 0x135   : >> { %v486_v20 = vadd.f32 1.0, %v485_v19 }
 0x137   : >> { %1605 = vrsqrt.f32 %v486_v20  ;;  %vm489_vm8 = vcmp.eq.f32.partialorder %v486_v20, inf  ;;  %v492_v22 = vand.u32 2147483648, %v486_v20  ;;  %vm491_vm9 = vcmp.eq.f32.partialorder %v486_v20, 0.0 }
 0x144   : >> { %v1606_v21 = vpop.eup %1605 }
 0x145   : >> { %v488_v23 = vmul.f32 %v1606_v21, %v486_v20 }
 0x147   : >> { %v490_v24 = vsel %vm489_vm8, %v486_v20, %v488_v23  ;;  %vm327_vm8 = vcmp.eq.s32.totalorder (%p408_p5), %v315_v11, %v312_v10  ;;  %v368_v11 = vmov (%p408_p5), %v1940_v11  ;;  %v331_v10 = vmov (%p408_p5), %v1938_v10 }
 0x148   : >> { %v493_v25 = vsel %vm491_vm9, %v492_v22, %v490_v24  ;;  %v334_v11 = vmov (%p408_p5), %v1940_v11  ;;  %v348_v10 = vmov (%p408_p5), %v1938_v10  ;;  %vm380_vm9 = vcmp.eq.s32.totalorder (%p408_p5), %v368_v11, %v365_v10 }
 0x149   : >> { %v494_v26 = vxor.u32 2147483648, %v493_v25  ;;  %v351_v11 = vmov (%p408_p5), %v1940_v11 }
 0x14b   : >> { %v495_v27 = vsel %vm484_vm10, %v493_v25, %v494_v26 }
 0x14c   : >> { %v496_v28 = vadd.f32 %v495_v27, %v483_v18 }
 0x14e   : >> { %1607 = vrcp.f32 %v496_v28 }
 0x15b   : >> { %v1608_v34 = vpop.eup %1607 }
 0x15c   : >> { %v504_v35 = vsel %vm503_vm11, 0.0, %v1608_v34 }
 0x15d   : >> { %v505_v36 = vmul.f32 %v504_v35, %v504_v35  ;;  %v509_v37 = vmul.f32 %v504_v35, %v477_v12 }
 0x15f   : >> { %v506_v38 = vadd.f32 1.0, %v505_v36  ;;  %v510_v39 = vsub.f32 %v475_v14, %v509_v37  ;;  %v512_v40 = vadd.f32 %v509_v37, %v479_v15 }
 0x161   : >> { %1609 = vrsqrt.f32 %v506_v38  ;;  %514 = vst [vmem:[%s513_s30] sm:$0xff] %v510_v39  ;;  %516 = vst [vmem:[%s515_s2] sm:$0xff] %v512_v40  ;;  %s581_s30 = smov [#allocation25]  ;;  %s2016_s2 = smov [#allocation10] }
 0x16e   : >> { %v1610_v41 = vpop.eup %1609 }
 0x16f   : >> { %518 = vst [vmem:[%s517_s10] sm:$0xff] %v1610_v41  ;;  %v508_v42 = vmul.f32 %v1610_v41, %v504_v35  ;;  %s2018_s10 = smov [#allocation13] }
 0x171   : >> { %520 = vst [vmem:[%s519_s11] sm:$0xff] %v508_v42  ;;  %s2022_s11 = smov [#allocation17] }
 0x176   : >> { %v522_v43 = vld [vmem:[%s521_s12] ss:$0 sm:$0xff]  ;;  %s2024_s12 = smov [#allocation18] }
 0x177   : >> { %v531_v44 = vsel %vm530_vm12, %v522_v43, 0.0  ;;  %v580_v23 = vld [vmem:[%s579_s29] ss:$0 sm:$0xff]  ;;  %s752_s29 = smov [#allocation18] }
 0x178   : >> { %532 = vadd.xlane.f32.xlu0 %v531_v44  ;;  %v537_v45 = vld [vmem:[%s536_s3] ss:$0 sm:$0xff]  ;;  %s2026_s3 = smov [#allocation15] }
 0x179   : >> { %v546_v46 = vsel %vm545_vm13, %v537_v45, 0.0  ;;  %v582_v24 = vld [vmem:[%s581_s30] ss:$0 sm:$0xff]  ;;  %s851_s30 = sadd.s32 (%p408_p5), 1, %s1851_s0  }
 0x17a   : > { %p404_p6 = scmp.ge.s32.totalorder (%p408_p5), %s851_s30, 15  ;;  %s2148_s0 = smov (%p408_p5), %s851_s30 }
 0x17c   : >> { %547 = vadd.xlane.f32.xlu0 %v546_v46 }
 0x201   : >> { %v533_v47 = vpop.xlane.xlu0 %532 }
 0x202   : >> { %535 = vst [vmem:[%s534_s13] sm:$0xff] %v533_v47  ;;  %s2028_s13 = smov [#allocation16] }
 0x205   : >> { %v548_v48 = vpop.xlane.xlu0 %547 }
 0x206   : >> { %550 = vst [vmem:[%s549_s16] sm:$0xff] %v548_v48  ;;  %s635_s16 = smov [#allocation17] }
 0x209   : >> { %v552_v54 = vld [vmem:[%s551_s14] sm:$0xff]  ;;  %s608_s14 = smov [#allocation22] }
 0x20a   : >> { %v776_v55 = vld [vmem:[%s775_s19] sm:$0xff]  ;;  %v563_v59 = vmul.f32 %v559_v49, %v552_v54  ;;  %v566_v60 = vmul.f32 %v560_v50, %v552_v54  ;;  %v573_v61 = vmul.f32 %v562_v51, %v552_v54  ;;  %v570_v4 = vmul.f32 %v561_v58, %v552_v54  ;;  %s622_s19 = smov [#allocation16] }
 0x20b   : >> { %v787_v62 = vmul.f32 %v783_v52, %v776_v55  ;;  %v790_v63 = vmul.f32 %v784_v53, %v776_v55  ;;  %v794_v0 = vmul.f32 %v785_v56, %v776_v55  ;;  %v797_v1 = vmul.f32 %v786_v57, %v776_v55  ;;  %v615_v55 = vld [vmem:[%s608_s14] ss:$0 sm:$0xff] }
 0x20d   : >> { %v554_v2 = vld [vmem:[%s553_s1] sm:$0xff]  ;;  %s2065_s1 = smov [#allocation18] }
 0x20e   : >> { %v778_v3 = vld [vmem:[%s777_s26] sm:$0xff]  ;;  %v567_v5 = vmul.f32 %v562_v51, %v554_v2  ;;  %v569_v6 = vmul.f32 %v559_v49, %v554_v2  ;;  %v572_v7 = vmul.f32 %v560_v50, %v554_v2  ;;  %v564_v14 = vmul.f32 %v561_v58, %v554_v2  ;;  %s727_s26 = smov [#allocation15] }
 0x20f   : >> { %v788_v8 = vmul.f32 %v785_v56, %v778_v3  ;;  %v791_v9 = vmul.f32 %v786_v57, %v778_v3  ;;  %v793_v12 = vmul.f32 %v783_v52, %v778_v3  ;;  %v796_v13 = vmul.f32 %v784_v53, %v778_v3 }
 0x210   : >> { %v568_v15 = vsub.f32 %v566_v60, %v567_v5  ;;  %v574_v16 = vadd.f32 %v573_v61, %v572_v7  ;;  %v571_v18 = vadd.f32 %v570_v4, %v569_v6  ;;  %v565_v22 = vsub.f32 %v563_v59, %v564_v14 }
 0x211   : >> { %v789_v17 = vsub.f32 %v787_v62, %v788_v8  ;;  %v792_v19 = vsub.f32 %v790_v63, %v791_v9  ;;  %v795_v20 = vadd.f32 %v794_v0, %v793_v12  ;;  %v798_v21 = vadd.f32 %v797_v1, %v796_v13 }
 0x212   : >> { %576 = vst [vmem:[%s1986_s17] sm:$0xff] %v568_v15  ;;  %578 = vst [vmem:[%s1988_s18] sm:$0xff] %v574_v16  ;;  %s607_s17 = smov [#allocation15]  ;;  %s648_s18 = smov [#allocation18] }
 0x213   : >> { %799 = vst [vmem:[%s1990_s20] sm:$0xff] %v789_v17  ;;  %577 = vst [vmem:[%s1999_s25] sm:$0xff] %v571_v18  ;;  %s2062_s20 = smov [#allocation17]  ;;  %s1859_s25 = smov 127  }
 0x214   : >> { %800 = vst [vmem:[%s1992_s22] sm:$0xff] %v792_v19  ;;  %801 = vst [vmem:[%s1994_s23] sm:$0xff] %v795_v20  ;;  %s663_s22 = smov [#allocation15]  ;;  %s1858_s23 = smov 1  }
 0x215   : >> { %802 = vst [vmem:[%s1997_s24] sm:$0xff] %v798_v21  ;;  %575 = vst [vmem:[%s1984_s15] sm:$0xff] %v565_v22  ;;  %s649_s15 = smov [#allocation23]  ;;  %s664_s24 = smov [#allocation16] }
 0x216   : >> { %v656_v56 = vld [vmem:[%s649_s15] ss:$0 sm:$0xff] }
 0x219   : >> { %v590_v39 = vld [vmem:[%s2024_s12] sm:$0xff] }
 0x21a   : >> { %v805_v25 = vld [vmem:[%s803_s27] ss:$0 sm:$0xff]  ;;  %v1335_v27 = vld [vmem:[%s803_s27 + $0x7] ss:$0 sm:$0xff]  ;;  %v598_v42 = vmul.f32 %v590_v39, %v582_v24  ;;  %v601_v46 = vmul.f32 %v590_v39, %v580_v23 }
 0x21b   : >> { %v1334_v26 = vld [vmem:[%s803_s27 - $0x1] sm:$0xfe]  ;;  %v1339_v34 = vld [vmem:[%s2016_s2 + $0x7] ss:$0 sm:$0xff] }
 0x21c   : >> { %v812_v28 = vsel %vm735_vm14, %v805_v25, %v1334_v26  ;;  %v816_v29 = vld [vmem:[%s804_s28] ss:$0 sm:$0xff]  ;;  %v1337_v30 = vld [vmem:[%s804_s28 + $0x1] sm:$0x7f] }
 0x21d   : >> { %v829_v31 = vld [vmem:[%s2016_s2] ss:$0 sm:$0xff]  ;;  %815 = vst [vmem:[%s803_s27] sm:$0xff] %v812_v28  ;;  %v824_v32 = vsel %vm747_vm15, %v1335_v27, %v1337_v30  ;;  %v1341_v37 = vld [vmem:[%s2018_s10 + $0x1] sm:$0x7f] }
 0x21e   : >> { %v1338_v33 = vld [vmem:[%s2016_s2 - $0x1] sm:$0xfe]  ;;  %1336 = vst [vmem:[%s803_s27 + $0x1] sm:$0x1] %v816_v29  ;;  %826 = vst [vmem:[%s804_s28] sm:$0xff] %v824_v32  ;;  %v848_v40 = vsel %vm747_vm15, %v1339_v34, %v1341_v37  ;;  %s751_s27 = smov [#allocation16]  ;;  %s728_s28 = smov [#allocation17] }
 0x21f   : >> { %v840_v35 = vld [vmem:[%s2018_s10] ss:$0 sm:$0xff]  ;;  %v836_v36 = vsel %vm735_vm14, %v829_v31, %v1338_v33 }
 0x220   : >> { %v589_v38 = vld [vmem:[%s2022_s11] sm:$0xff]  ;;  %839 = vst [vmem:[%s2016_s2] sm:$0xff] %v836_v36  ;;  %850 = vst [vmem:[%s2018_s10] sm:$0xff] %v848_v40  ;;  %s335_s10 = smov (%p408_p5), [#allocation16] }
 0x221   : >> { %v597_v41 = vmul.f32 %v589_v38, %v580_v23  ;;  %v600_v43 = vmul.f32 %v589_v38, %v582_v24  ;;  %v587_v44 = vld [vmem:[%s2026_s3] sm:$0xff]  ;;  %1340 = vst [vmem:[%s2016_s2 + $0x1] sm:$0x1] %v840_v35  ;;  %s316_s2 = smov (%p408_p5), [#allocation15] }
 0x222   : >> { %v588_v45 = vld [vmem:[%s2028_s13] sm:$0xff]  ;;  %v591_v47 = vmul.f32 %v587_v44, %v580_v23  ;;  %v594_v49 = vmul.f32 %v587_v44, %v582_v24 }
 0x223   : >> { %v592_v48 = vmul.f32 %v588_v45, %v582_v24  ;;  %v599_v50 = vsub.f32 %v597_v41, %v598_v42  ;;  %v595_v51 = vmul.f32 %v588_v45, %v580_v23  ;;  %v602_v52 = vadd.f32 %v601_v46, %v600_v43 }
 0x225   : >> { %v593_v53 = vsub.f32 %v591_v47, %v592_v48  ;;  %605 = vst [vmem:[%s2022_s11] sm:$0xff] %v599_v50  ;;  %v596_v54 = vadd.f32 %v595_v51, %v594_v49  ;;  %606 = vst [vmem:[%s2024_s12] sm:$0xff] %v602_v52  ;;  %s352_s11 = smov (%p408_p5), [#allocation17]  ;;  %s369_s12 = smov (%p408_p5), [#allocation18] }
 0x227   : >> { %603 = vst [vmem:[%s2026_s3] sm:$0xff] %v593_v53  ;;  %604 = vst [vmem:[%s2028_s13] sm:$0xff] %v596_v54 }
 0x22c   : >> { %v642_v57 = vld [vmem:[%s635_s16] sm:$0xff] }
 0x22d   : >> { %v646_v58 = vsel %vm645_vm0, 0.0, %v642_v57  ;;  %v657_v60 = vld [vmem:[%s648_s18] sm:$0xff] }
 0x22e   : >> { %v616_v59 = vld [vmem:[%s607_s17] sm:$0xff]  ;;  %647 = vst [vmem:[%s635_s16] sm:$0xff] %v646_v58  ;;  %v661_v63 = vsel %vm660_vm3, %v656_v56, %v657_v60 }
 0x22f   : >> { %v620_v61 = vsel %vm619_vm1, %v615_v55, %v616_v59  ;;  %v629_v62 = vld [vmem:[%s622_s19] sm:$0xff]  ;;  %662 = vst [vmem:[%s648_s18] sm:$0xff] %v661_v63 }
 0x230   : >> { %621 = vst [vmem:[%s607_s17] sm:$0xff] %v620_v61  ;;  %v633_v0 = vsel %vm632_vm4, 0.0, %v629_v62 }
 0x231   : >> { %634 = vst [vmem:[%s622_s19] sm:$0xff] %v633_v0 }
 0x235   : >> { %v701_v1 = vld [vmem:[%s2062_s20] sm:$0xff] }
 0x236   : >> { %702 = vrot.lane.b32.xlu0 %v701_v1, %s1858_s23  ;;  %v697_v4 = vld [vmem:[%s2065_s1] sm:$0xff] }
 0x237   : >> { %v669_v2 = vld [vmem:[%s663_s22] sm:$0xff] }
 0x238   : >> { %670 = vrot.lane.b32.xlu1 %v669_v2, %s1858_s23  ;;  %v665_v3 = vld [vmem:[%s664_s24] sm:$0xff] }
 0x23c   : >> { %666 = vrot.lane.b32.xlu1 %v665_v3, %s1858_s23 }
 0x240   : >> { %687 = vrot.lane.b32.xlu1 %v665_v3, %s1859_s25 }
 0x244   : >> { %698 = vrot.lane.b32.xlu1 %v697_v4, %s1858_s23 }
 0x248   : >> { %719 = vrot.lane.b32.xlu1 %v697_v4, %s1859_s25 }
 0x2a8   : >> { %v703_v13 = vpop.permute.xlu0 %702 }
 0x2a9   : >> { %v707_v15 = vsel %vm674_vm5, %v701_v1, %v703_v13 }
 0x2aa   : >> { %v671_v5 = vpop.permute.xlu1 %670 }
 0x2ab   : >> { %v675_v6 = vsel %vm674_vm5, %v669_v2, %v671_v5 }
 0x2ae   : >> { %v667_v7 = vpop.permute.xlu1 %666 }
 0x2af   : >> { %v679_v8 = vsel %vm678_vm6, %v667_v7, %v675_v6 }
 0x2b0   : >> { %v685_v9 = vsel %vm1193_vm2, %v679_v8, 0.0 }
 0x2b1   : >> { %693 = vst [vmem:[%s663_s22] sm:$0xff] %v685_v9 }
 0x2b2   : >> { %v688_v12 = vpop.permute.xlu1 %687 }
 0x2b3   : >> { %v692_v14 = vsel %vm691_vm7, %v669_v2, %v688_v12 }
 0x2b4   : >> { %694 = vst [vmem:[%s664_s24] sm:$0xff] %v692_v14 }
 0x2b6   : >> { %v699_v16 = vpop.permute.xlu1 %698 }
 0x2b7   : >> { %v711_v17 = vsel %vm678_vm6, %v699_v16, %v707_v15 }
 0x2b8   : >> { %v729_v18 = vld [vmem:[%s727_s26] ss:$0 sm:$0xff]  ;;  %v1327_v20 = vld [vmem:[%s727_s26 + $0x7] ss:$0 sm:$0xff]  ;;  %v717_v22 = vsel %vm1193_vm2, %v711_v17, 0.0 }
 0x2b9   : >> { %v1326_v19 = vld [vmem:[%s727_s26 - $0x1] sm:$0xfe]  ;;  %725 = vst [vmem:[%s2062_s20] sm:$0xff] %v717_v22 }
 0x2ba   : >> { %v736_v21 = vsel %vm735_vm14, %v729_v18, %v1326_v19  ;;  %v720_v23 = vpop.permute.xlu1 %719 }
 0x2bb   : >> { %739 = vst [vmem:[%s727_s26] sm:$0xff] %v736_v21  ;;  %v753_v24 = vld [vmem:[%s751_s27] ss:$0 sm:$0xff]  ;;  %v1331_v26 = vld [vmem:[%s751_s27 + $0x7] ss:$0 sm:$0xff]  ;;  %v724_v27 = vsel %vm691_vm7, %v701_v1, %v720_v23 }
 0x2bc   : >> { %v1330_v25 = vld [vmem:[%s751_s27 - $0x1] sm:$0xfe]  ;;  %726 = vst [vmem:[%s2065_s1] sm:$0xff] %v724_v27 }
 0x2bd   : >> { %v760_v28 = vsel %vm735_vm14, %v753_v24, %v1330_v25 }
 0x2be   : >> { %763 = vst [vmem:[%s751_s27] sm:$0xff] %v760_v28 }
 0x2c0   : >> { %v740_v29 = vld [vmem:[%s728_s28] ss:$0 sm:$0xff]  ;;  %v1329_v30 = vld [vmem:[%s728_s28 + $0x1] sm:$0x7f] }
 0x2c1   : >> { %1328 = vst [vmem:[%s727_s26 + $0x1] sm:$0x1] %v740_v29  ;;  %v748_v31 = vsel %vm747_vm15, %v1327_v20, %v1329_v30 }
 0x2c2   : >> { %750 = vst [vmem:[%s728_s28] sm:$0xff] %v748_v31 }
 0x2c3   : >> { %v764_v32 = vld [vmem:[%s752_s29] ss:$0 sm:$0xff]  ;;  %v1333_v33 = vld [vmem:[%s752_s29 + $0x1] sm:$0x7f] }
 0x2c4   : >> { %1332 = vst [vmem:[%s751_s27 + $0x1] sm:$0x1] %v764_v32  ;;  %v772_v34 = vsel %vm747_vm15, %v1331_v26, %v1333_v33 }
 0x2c5   : >> { %774 = vst [vmem:[%s752_s29] sm:$0xff] %v772_v34  ;;  %410 = sbr.rel (!%p408_p5) target bundleno = 265 (0x109), region = 319 }
 0x2c8   : > { %v322_v35 = vld [vmem:[%s316_s2] sm:$0xff] (%p408_p5) }
 0x2c9   : > { %v323_v37 = vsel (%p408_p5), %vm1193_vm2, %v322_v35, 0.0  ;;  %v358_v39 = vld [vmem:[%s352_s11] sm:$0xff] (%p408_p5) }
 0x2ca   : > { %v324_v41 = vmul.f32 %v323_v37, %v323_v37  ;;  %v359_v43 = vsel %vm1193_vm2, %v358_v39, 0.0 }
 0x2cb   : > { %v341_v36 = vld [vmem:[%s335_s10] sm:$0xff]  ;;  %v360_v45 = vmul.f32 %v359_v43, %v359_v43 }
 0x2cc   : > { %v342_v38 = vsel %vm1193_vm2, %v341_v36, 0.0  ;;  %v375_v40 = vld [vmem:[%s369_s12] sm:$0xff]  ;;  %v328_v48 = vsel %vm327_vm8, 0.0, %v324_v41 }
 0x2cd   : > { %v343_v42 = vmul.f32 %v342_v38, %v342_v38  ;;  %v376_v44 = vsel %vm1193_vm2, %v375_v40, 0.0 }
 0x2ce   : > { %v377_v47 = vmul.f32 %v376_v44, %v376_v44 }
 0x2cf   : > { %v345_v46 = vadd.f32 %v343_v42, %v324_v41  ;;  %v344_v49 = vadd.f32 %v343_v42, %v328_v48 }
 0x2d0   : > { %v381_v52 = vsel %vm380_vm9, 0.0, %v377_v47 }
 0x2d1   : > { %v362_v50 = vadd.f32 %v360_v45, %v345_v46  ;;  %v361_v51 = vadd.f32 %v360_v45, %v344_v49 }
 0x2d3   : > { %v383_v53 = vadd.f32 %v377_v47, %v362_v50  ;;  %v382_v54 = vadd.f32 %v381_v52, %v361_v51 }
 0x2d5   : > { %384 = vadd.xlane.f32.xlu0 %v383_v53 }
 0x2d9   : > { %392 = vadd.xlane.f32.xlu0 %v382_v54 }
 0x35e   : > { %v385_v55 = vpop.xlane.xlu0 %384 }
 0x35f   : > { %v386_v56 = vrot.slane %v385_v55, 4 }
 0x361   : > { %v387_v57 = vadd.f32 %v386_v56, %v385_v55 }
 0x362   : > { %v393_v58 = vpop.xlane.xlu0 %392 }
 0x363   : > { %v388_v59 = vrot.slane %v387_v57, 2  ;;  %v394_v60 = vrot.slane %v393_v58, 4 }
 0x365   : > { %v395_v61 = vadd.f32 %v394_v60, %v393_v58  ;;  %v389_v62 = vadd.f32 %v388_v59, %v387_v57 }
 0x367   : > { %v396_v63 = vrot.slane %v395_v61, 2  ;;  %v390_v1 = vrot.slane %v389_v62, 1 }
 0x369   : > { %v397_v0 = vadd.f32 %v396_v63, %v395_v61  ;;  %v391_v4 = vadd.f32 %v390_v1, %v389_v62 }
 0x36b   : > { %v398_v2 = vrot.slane %v397_v0, 1 }
 0x36d   : > { %v399_v3 = vadd.f32 %v398_v2, %v397_v0 }
 0x36f   : > { %1352 = vpush %v399_v3 }
 0x370   : > { %1354 = vpush %v391_v4 }
 0x3a0   : > { %s1353_s21 = spop %1352 }
 0x3a1   : > { %s1355_s3 = spop %1354 }
 0x3a2   : > { %s402_s13 = smul.f32 1e-10, %s1355_s3 }
 0x3a4   : > { %p403_p7 = scmp.le.f32.partialorder %s1353_s21, %s402_s13 }
 0x3a6   : > { %p405_p8 = por %p404_p6, %p403_p7 }
 0x3a8   :  { %853 = sbr.rel (!%p405_p8) target bundleno = 264 (0x108), region = 330 }
 0x3ad PF:  { %s854_s14 = smov [#allocation15]  ;;  %v858_v10 = vmov %v1938_v10  ;;  %v861_v11 = vmov %v1940_v11  ;;  %s1860_s15 = smov [#allocation10]  }
 0x3ae   :  { %v878_v10 = vmov %v1938_v10  ;;  %v881_v11 = vmov %v1940_v11  ;;  %s1050_s16 = sshll.u32 %s1860_s15, 4  ;;  %v862_v5 = vld [vmem:[%s854_s14] sm:$0xff]  ;;  %vm865_vm10 = vcmp.eq.s32.totalorder %v861_v11, %v858_v10  ;;  %s874_s0 = smov [#allocation18]  ;;  %s1051_s16 = int_to_ptr.vmem [resolvable:$true] %s1050_s16 }
 0x3af   :  { %vm885_vm11 = vcmp.eq.s32.totalorder %v881_v11, %v878_v10  ;;  %v866_v6 = vsel %vm865_vm10, %v862_v5, 0.0  ;;  %s1611_s17 = scalar_lea.vmem %s1051_s16, 128  ;;  %p1616_p10 = scmp.lt.s32.totalorder %s1051_s16, %s1051_s16 }
 0x3b0   :  { %p1612_p9 = scmp.ne.s32.totalorder %s1051_s16, %s1611_s17  ;;  %p1617_p11 = scmp.lt.s32.totalorder %s1611_s17, %s1611_s17 }
 0x3b2   :  { %p1618_p12 = por %p1617_p11, %p1616_p10 }
 0x3b4   :  { %p1619_p13 = pnand %p1618_p12, %p1612_p9 }
 0x3b6   :  { %1622 = shalt.err (!%p1619_p13)
}
 0x3b7   :  { %1053 = dma.vmem_to_hbm [thread:$0]  %s1051_s16, 128, %s2145_s7, [#allocation11]   ;;  %v867_v7 = vrot.slane %v866_v6, 4  ;;  %v882_v8 = vld [vmem:[%s874_s0] sm:$0xff] }
 0x3b8   :  { %v886_v9 = vsel %vm885_vm11, %v882_v8, 0.0  ;;  %s1861_s20 = smov [#allocation8]   ;;  %s1862_s23 = smov [#allocation12]  }
 0x3b9   :  { %v868_v12 = vadd.f32 %v867_v7, %v866_v6  ;;  %v887_v13 = vrot.slane %v886_v9, 4  ;;  %s1043_s22 = sshll.u32 %s1861_s20, 4  ;;  %s1057_s24 = sshll.u32 %s1862_s23, 4  ;;  %s1044_s22 = int_to_ptr.vmem [resolvable:$true] %s1043_s22  ;;  %s1058_s24 = int_to_ptr.vmem [resolvable:$true] %s1057_s24 }
 0x3ba   :  { %s1631_s25 = scalar_lea.vmem %s1044_s22, 128  ;;  %p1636_p1 = scmp.lt.s32.totalorder %s1044_s22, %s1044_s22 }
 0x3bb   :  { %v869_v10 = vrot.slane %v868_v12, 2  ;;  %v888_v11 = vadd.f32 %v887_v13, %v886_v9  ;;  %p1632_p0 = scmp.ne.s32.totalorder %s1044_s22, %s1631_s25  ;;  %p1637_p2 = scmp.lt.s32.totalorder %s1631_s25, %s1631_s25 }
 0x3bd   :  { %p1638_p3 = por %p1637_p2, %p1636_p1 }
 0x3bf   :  { %p1639_p4 = pnand %p1638_p3, %p1632_p0 }
 0x3c1   :  { %1642 = shalt.err (!%p1639_p4)
}
 0x3c2   :  { %1046 = dma.vmem_to_hbm [thread:$0]  %s1044_s22, 128, %s2144_s6, [#allocation9]   ;;  %v870_v14 = vadd.f32 %v869_v10, %v868_v12  ;;  %v889_v15 = vrot.slane %v888_v11, 2 }
 0x3c3   :  { %s1651_s26 = scalar_lea.vmem %s1058_s24, 128  ;;  %p1656_p6 = scmp.lt.s32.totalorder %s1058_s24, %s1058_s24 }
 0x3c4   :  { %p1652_p5 = scmp.ne.s32.totalorder %s1058_s24, %s1651_s26  ;;  %p1657_p7 = scmp.lt.s32.totalorder %s1651_s26, %s1651_s26 }
 0x3c6   :  { %p1658_p8 = por %p1657_p7, %p1656_p6 }
 0x3c8   :  { %p1659_p9 = pnand %p1658_p8, %p1652_p5 }
 0x3ca   :  { %1662 = shalt.err (!%p1659_p9)
}
 0x3cb   :  { %1060 = dma.vmem_to_hbm [thread:$0]  %s1058_s24, 128, %s2146_s8, [#allocation11]   ;;  %v871_v16 = vrot.slane %v870_v14, 1  ;;  %v890_v17 = vadd.f32 %v889_v15, %v888_v11 }
 0x3cc   :  { %s1863_s29 = smov [#allocation13]   ;;  %s855_s2 = smov [#allocation4] }
 0x3cd   :  { %s1064_s30 = sshll.u32 %s1863_s29, 4  ;;  %s1065_s30 = int_to_ptr.vmem [resolvable:$true] %s1064_s30 }
 0x3ce   :  { %s1671_s6 = scalar_lea.vmem %s1065_s30, 128  ;;  %p1676_p11 = scmp.lt.s32.totalorder %s1065_s30, %s1065_s30 }
 0x3cf   :  { %p1672_p10 = scmp.ne.s32.totalorder %s1065_s30, %s1671_s6  ;;  %p1677_p12 = scmp.lt.s32.totalorder %s1671_s6, %s1671_s6 }
 0x3d1   :  { %p1678_p13 = por %p1677_p12, %p1676_p11 }
 0x3d3   :  { %p1679_p0 = pnand %p1678_p13, %p1672_p10 }
 0x3d5   :  { %1682 = shalt.err (!%p1679_p0)
}
 0x3d6   :  { %1067 = dma.vmem_to_hbm [thread:$0]  %s1065_s30, 128, %s2147_s9, [#allocation14]   ;;  %v872_v18 = vadd.f32 %v871_v16, %v870_v14  ;;  %v891_v19 = vrot.slane %v890_v17, 1 }
 0x3d7   :  { %s875_s8 = smov [#allocation6] }
 0x3d8   :  { %873 = vst [vmem:[%s855_s2] sm:$0x1] %v872_v18  ;;  %v892_v20 = vadd.f32 %v891_v19, %v890_v17 }
 0x3da   :  { %893 = vst [vmem:[%s875_s8] sm:$0x1] %v892_v20 }
 0x3df   :  { %v898_v21 = vld [vmem:[#allocation4] sm:$0x1] }
 0x3e0   :  { %901 = vst [vmem:[#allocation5] sm:$0x1] %v898_v21 }
 0x3e1   :  { %v906_v22 = vld [vmem:[#allocation6] sm:$0x1] }
 0x3e2   :  { %909 = vst [vmem:[#allocation7] sm:$0x1] %v906_v22 }
 0x3e7   :  { %v973_v23 = vld [vmem:[#allocation5] sm:$0x1] }
 0x3e8   :  { %974 = vst [vmem:[%s2142_s4] sm:$0x1] %v973_v23 }
 0x3e9   :  { %v1038_v24 = vld [vmem:[#allocation7] sm:$0x1] }
 0x3ea   :  { %1039 = vst [vmem:[%s2143_s5] sm:$0x1] %v1038_v24 }
 0x3eb   :  { %1811 = dma.done.wait [#allocation9], 128  }
 0x3ec   :  { %1812 = vsyncadd [#allocation9], 4294967168 }
 0x3ed   :  { %1813 = dma.done.wait [#allocation11], 256  }
 0x3ee   :  { %1814 = vsyncadd [#allocation11], 4294967040 }
 0x3ef   :  { %1815 = dma.done.wait [#allocation14], 128  }
 0x3f0   :  { %1816 = vsyncadd [#allocation14], 4294967168 }
 0x3f1   :  { %1076 = vsyncpa [#allocation9], 1 }
 0x3f2   :  { %1077 = vsyncpa [#allocation11], 1 }
 0x3f3   :  { %1078 = vsyncpa [#allocation14], 1 }

// kernel: loss_criterion.1
= control target key start
LH: loop header
LB: loop body
LE: loop exit
PB: predicated region body
PF: predicated region fallthrough
CT: control target
= control target key end

     0   :  { %10 = vsyncpa [#allocation4], 0  ;;  %s1074_s0 = inlined_call_operand.hbm [shape: f32[32,16], index: 0, kind: input, shape index: {}]   ;;  %s1075_s1 = inlined_call_operand.hbm [shape: f32[32,16], index: 1, kind: input, shape index: {}]   ;;  %s1076_s2 = inlined_call_operand.hbm [shape: f32[32,16], index: 2, kind: input, shape index: {}]   ;;  %s1077_s3 = inlined_call_operand.vmem [shape: f32[2], index: 3, kind: output, shape index: {0}]   ;;  %s1078_s4 = inlined_call_operand.vmem [shape: f32[16,16], index: 4, kind: output, shape index: {1}]  }
   0x1   :  { %12 = vsyncpa [#allocation4 + $0x1], 0 }
   0x2   :  { %13 = vsyncpa [#allocation7], 0 }
   0x3   :  { %15 = vsyncpa [#allocation7 + $0x1], 0 }
   0x4   :  { %16 = vsyncpa [#allocation5], 0  ;;  %s853_s15 = smov 0   ;;  %s855_s16 = smov 0  }
   0x5   :  { %s857_s17 = smov 0   ;;  %s859_s18 = smov 0  }
   0x6 LB: > { %s872_s19 = sadd.s32 4294967295, %s819_s18   ;;  %s875_s20 = sadd.s32 1, %s819_s18   ;;  %s819_s18 = sphi %s859_s18, %s1094_s18   ;;  %s815_s17 = sphi %s857_s17, %s1093_s17   ;;  %s811_s16 = sphi %s855_s16, %s1092_s16   ;;  %s807_s15 = sphi %s853_s15, %s1091_s15  }
   0x7   : > { %s26_s21 = ssub.s32 %s819_s18, %s875_s20  ;;  %s29_s22 = sadd.s32 1, %s815_s17 }
   0x8   : > { %p27_p0 = scmp.eq.s32.totalorder %s26_s21, 0  ;;  %p36_p1 = scmp.ne.s32.totalorder %s815_s17, %s811_s16 }
   0x9   : > { %p37_p2 = scmp.eq.s32.totalorder %s819_s18, 0  ;;  %p42_p3 = scmp.ne.s32.totalorder %s811_s16, %s807_s15 }
   0xa   : > { %s885_s23 = scalar_select %p27_p0, %s815_s17, %s29_s22  }
   0xb   : > { %p38_p4 = por %p37_p2, %p36_p1  ;;  %p43_p5 = scmp.eq.s32.totalorder %s872_s19, 0 }
   0xc   : > { %p638_p6 = scmp.lt.s32.totalorder %s819_s18, 2  ;;  %s160_s25 = sand.u32 1, %s815_s17  }
   0xd   : > { %p889_p7 = por %p43_p5, %p42_p3  ;;  %s896_s26 = sshll.u32 %s160_s25, 4 }
   0xe   : > { %s899_s27 = sshll.u32 %s819_s18, 8  ;;  %p901_p8 = pnand %p638_p6, %p38_p4 }
   0xf   : > { %s1082_s24 = scalar_select %p889_p7, 1, 0 }
  0x10   : > { %s181_s29 = sand.u32 1, %s819_s18   ;;  %s910_s6 = scalar_lea.hbm %s1075_s1, %s899_s27 }
  0x11   : > { %s185_s7 = scalar_lea.vmem [#allocation6], %s896_s26  ;;  %s917_s9 = scalar_lea.sflag [#allocation7], %s181_s29 }
  0x12   : > { %s192_s8 = sshll.u32 %s185_s7, 4  ;;  %s679_s10 = scalar_lea.hbm %s910_s6, 256  ;;  %s914_s8 = int_to_ptr.vmem [resolvable:$true] %s192_s8 }
  0x13   : > { %p680_p11 = scmp.ne.s32.totalorder %s910_s6, %s679_s10  ;;  %p923_p12 = pneg %p901_p8 }
  0x14   : > { %s684_s14 = scalar_lea.hbm %s1075_s1, 512  ;;  %p685_p1 = scmp.lt.s32.totalorder %s910_s6, %s1075_s1 }
  0x15   : > { %p682_p13 = pnand %p923_p12, %p680_p11  ;;  %p686_p2 = scmp.lt.s32.totalorder %s684_s14, %s679_s10 }
  0x17   : > { %p683_p0 = pneg %p682_p13  ;;  %p687_p3 = por %p686_p2, %p685_p1 }
  0x19   : > { %p688_p4 = pnand %p687_p3, %p683_p0 }
  0x1b   : > { %691 = shalt.err (!%p688_p4)
}
  0x1c   : > { %s692_s22 = scalar_lea.vmem %s914_s8, 256  ;;  %s821_s29 = smov [#allocation6]  }
  0x1d   : > { %p693_p5 = scmp.ne.s32.totalorder %s914_s8, %s692_s22  ;;  %s697_s30 = sshll.u32 %s821_s29, 4  ;;  %s698_s30 = int_to_ptr.vmem [resolvable:$false] %s697_s30 }
  0x1e   : > { %s699_s5 = scalar_lea.vmem %s698_s30, 512  ;;  %p700_p13 = scmp.lt.s32.totalorder %s914_s8, %s698_s30 }
  0x1f   : > { %p695_p6 = pnand %p693_p5, %p923_p12  ;;  %p701_p9 = scmp.lt.s32.totalorder %s699_s5, %s692_s22 }
  0x21   : > { %p696_p11 = pneg %p695_p6  ;;  %p702_p10 = por %p701_p9, %p700_p13 }
  0x23   : > { %p703_p7 = pnand %p702_p10, %p696_p11 }
  0x25   : > { %706 = shalt.err (!%p703_p7)
}
  0x26   : > { %s1080_s7 = smov 128   ;;  %s823_s10 = smov 8  }
  0x27   : > { %634 = dma.hbm_to_vmem [thread:$0]  (!%p901_p8), %s910_s6, 256, %s914_s8, %s917_s9, %s1080_s7, %s1080_s7, %s823_s10  }
  0x28   : > { %p1085_p9 = scmp.lt.s32.totalorder %s819_s18, 3  ;;  %p1086_p7 = scmp.ge.s32.totalorder %s819_s18, 1 }
  0x29   : > { %s961_s15 = scalar_lea.hbm %s1074_s0, %s899_s27  ;;  %s164_s21 = scalar_lea.vmem [#allocation3], %s896_s26 }
  0x2a   : > { %p953_p10 = pnand %p1086_p7, %p1085_p9  ;;  %s171_s22 = sshll.u32 %s164_s21, 4  ;;  %s964_s22 = int_to_ptr.vmem [resolvable:$true] %s171_s22 }
  0x2b   : > { %s970_s18 = scalar_lea.hbm %s1076_s2, %s899_s27  ;;  %s161_s8 = scalar_lea.sflag [#allocation4], %s160_s25 }
  0x2c   : > { %s1087_s12 = scalar_select %p953_p10, 1, 0 }
  0x2d   : > { %s707_s30 = scalar_lea.hbm %s961_s15, 256  ;;  %s712_s14 = scalar_lea.hbm %s1074_s0, 512 }
  0x2e   : > { %p708_p0 = scmp.ne.s32.totalorder %s961_s15, %s707_s30  ;;  %p713_p3 = scmp.lt.s32.totalorder %s961_s15, %s1074_s0 }
  0x2f   : > { %p714_p4 = scmp.lt.s32.totalorder %s712_s14, %s707_s30 }
  0x30   : > { %p710_p1 = pnand %p708_p0, %p923_p12 }
  0x31   : > { %p715_p5 = por %p714_p4, %p713_p3 }
  0x32   : > { %p711_p2 = pneg %p710_p1 }
  0x34   : > { %p716_p6 = pnand %p715_p5, %p711_p2 }
  0x36   : > { %719 = shalt.err (!%p716_p6)
}
  0x37   : > { %s720_s25 = scalar_lea.vmem %s964_s22, 256  ;;  %s824_s27 = smov [#allocation3]  }
  0x38   : > { %p721_p11 = scmp.ne.s32.totalorder %s964_s22, %s720_s25  ;;  %s725_s29 = sshll.u32 %s824_s27, 4  ;;  %s726_s29 = int_to_ptr.vmem [resolvable:$false] %s725_s29 }
  0x39   : > { %s727_s6 = scalar_lea.vmem %s726_s29, 512  ;;  %p728_p7 = scmp.lt.s32.totalorder %s964_s22, %s726_s29 }
  0x3a   : > { %p723_p13 = pnand %p721_p11, %p923_p12  ;;  %p729_p0 = scmp.lt.s32.totalorder %s727_s6, %s720_s25 }
  0x3c   : > { %p724_p9 = pneg %p723_p13  ;;  %p730_p1 = por %p729_p0, %p728_p7 }
  0x3e   : > { %p731_p10 = pnand %p730_p1, %p724_p9 }
  0x40   : > { %734 = shalt.err (!%p731_p10)
}
  0x41   : > { %s1088_s7 = smov 128   ;;  %s206_s30 = scalar_lea.vmem [#allocation8], %s896_s26 }
  0x42   : > { %631 = dma.hbm_to_vmem [thread:$0]  (!%p901_p8), %s961_s15, 256, %s964_s22, %s161_s8, %s1088_s7, %s1088_s7, %s823_s10  }
  0x43   : > { %s213_s5 = sshll.u32 %s206_s30, 4  ;;  %s735_s13 = scalar_lea.hbm %s970_s18, 256  ;;  %s214_s5 = int_to_ptr.vmem [resolvable:$true] %s213_s5 }
  0x44   : > { %p736_p2 = scmp.ne.s32.totalorder %s970_s18, %s735_s13  ;;  %s740_s25 = scalar_lea.hbm %s1076_s2, 512 }
  0x45   : > { %p741_p4 = scmp.lt.s32.totalorder %s970_s18, %s1076_s2  ;;  %p742_p5 = scmp.lt.s32.totalorder %s740_s25, %s735_s13 }
  0x46   : > { %p738_p10 = pnand %p736_p2, %p923_p12 }
  0x47   : > { %p743_p6 = por %p742_p5, %p741_p4 }
  0x48   : > { %p739_p3 = pneg %p738_p10 }
  0x4a   : > { %p744_p11 = pnand %p743_p6, %p739_p3 }
  0x4c   : > { %747 = shalt.err (!%p744_p11)
}
  0x4d   : > { %s748_s26 = scalar_lea.vmem %s214_s5, 256  ;;  %s825_s15 = smov [#allocation8]  }
  0x4e   : > { %p749_p13 = scmp.ne.s32.totalorder %s214_s5, %s748_s26  ;;  %s753_s22 = sshll.u32 %s825_s15, 4  ;;  %s754_s22 = int_to_ptr.vmem [resolvable:$false] %s753_s22 }
  0x4f   : > { %s755_s8 = scalar_lea.vmem %s754_s22, 512  ;;  %p756_p0 = scmp.lt.s32.totalorder %s214_s5, %s754_s22 }
  0x50   : > { %p751_p9 = pnand %p749_p13, %p923_p12  ;;  %p757_p1 = scmp.lt.s32.totalorder %s755_s8, %s748_s26 }
  0x52   : > { %p752_p7 = pneg %p751_p9  ;;  %p758_p2 = por %p757_p1, %p756_p0 }
  0x54   : > { %p759_p10 = pnand %p758_p2, %p752_p7 }
  0x56   : > { %762 = shalt.err (!%p759_p10)
}
  0x57   : > { %637 = dma.hbm_to_vmem [thread:$0]  (!%p901_p8), %s970_s18, 256, %s214_s5, %s917_s9, %s1088_s7, %s1088_s7, %s823_s10  }
  0x58   : > { %p1089_p12 = scmp.ne.s32.totalorder %s1087_s12, 0 }
  0x59   : > { %s227_s11 = sand.u32 (!%p1089_p12), 1, %s811_s16   ;;  %p1090_p3 = scmp.ne.s32.totalorder (!%p1089_p12), %s1082_s24, 0 }
  0x5a   : > { %225 = sbr.rel (%p1089_p12) target bundleno = 655 (0x28f), region = 32  ;;  %s584_s6 = sshll.u32 (!%p1089_p12), %s227_s11, 4 }
  0x5b   : > { %s228_s30 = scalar_lea.sflag (!%p1089_p12), [#allocation4], %s227_s11  ;;  %s231_s13 = scalar_lea.vmem (!%p1089_p12), [#allocation3], %s584_s6 }
  0x5f   : > { %794 = dma.done.wait (%p1090_p3), %s228_s30, 256  }
  0x60   : > { %796 = vsyncadd (%p1090_p3), %s228_s30, 4294967040  ;;  %s236_s28 = sand.u32 1, %s872_s19   ;;  %s240_s21 = scalar_lea.vmem [#allocation6], %s584_s6 }
  0x61   : > { %s237_s14 = scalar_lea.sflag [#allocation7], %s236_s28 }
  0x62   : > { %798 = dma.done.wait (%p1090_p3), %s237_s14, 512  }
  0x63   : > { %800 = vsyncadd (%p1090_p3), %s237_s14, 4294966784  ;;  %v282_v0 = vld [vmem:[%s231_s13] sm:$0xff]  ;;  %v283_v1 = vld [vmem:[%s231_s13 + $0x8] sm:$0xff]  ;;  %s249_s9 = scalar_lea.vmem [#allocation8], %s584_s6  ;;  %vm292_vm0 = vcmask 130048   ;;  %p587_p8 = scmp.ne.s32.totalorder %s872_s19, 0 }
  0x64   : > { %v284_v2 = vld [vmem:[%s240_s21] sm:$0xff]  ;;  %v285_v3 = vld [vmem:[%s240_s21 + $0x8] sm:$0xff]  ;;  %s826_s12 = smov (!%p587_p8), 0.0  }
  0x65   : > { %v288_v4 = vsub.f32 %v282_v0, %v284_v2  ;;  %v286_v5 = vld [vmem:[%s249_s9] sm:$0xff]  ;;  %v287_v6 = vld [vmem:[%s249_s9 + $0x8] sm:$0xff]  ;;  %v289_v7 = vsub.f32 %v283_v1, %v285_v3  ;;  %326 = sst [smem:[#allocation2]] (!%p587_p8), %s826_s12 }
  0x66   : > { %v305_v8 = vsub.f32 %v286_v5, %v282_v0  ;;  %v306_v9 = vsub.f32 %v287_v6, %v283_v1  ;;  %328 = sst [smem:[#allocation2 + $0x1]] (!%p587_p8), %s826_s12 }
  0x67   : > { %v290_v10 = vmul.f32 %v288_v4, %v288_v4  ;;  %v291_v11 = vmul.f32 %v289_v7, %v289_v7 }
  0x68   : > { %v307_v12 = vand.u32 2147483647, %v305_v8  ;;  %v308_v13 = vand.u32 2147483647, %v306_v9 }
  0x69   : > { %v293_v14 = vsel %vm292_vm0, %v290_v10, 0.0  ;;  %v294_v15 = vsel %vm292_vm0, %v291_v11, 0.0 }
  0x6a   : > { %v309_v16 = vsel %vm292_vm0, %v307_v12, 0.0  ;;  %v310_v17 = vsel %vm292_vm0, %v308_v13, 0.0  ;;  %v295_v18 = vadd.f32 %v294_v15, %v293_v14 }
  0x6b   : > { %v311_v19 = vadd.f32 %v310_v17, %v309_v16 }
  0x6c   : > { %296 = vadd.xlane.f32.xlu0 %v295_v18 }
  0x70   : > { %312 = vadd.xlane.f32.xlu0 %v311_v19 }
  0xf5   : > { %v297_v20 = vpop.xlane.xlu0 %296 }
  0xf6   : > { %v298_v21 = vrot.slane %v297_v20, 4 }
  0xf8   : > { %v299_v22 = vadd.f32 %v298_v21, %v297_v20 }
  0xf9   : > { %v313_v23 = vpop.xlane.xlu0 %312 }
  0xfa   : > { %v300_v24 = vrot.slane %v299_v22, 2  ;;  %v314_v25 = vrot.slane %v313_v23, 4 }
  0xfc   : > { %v315_v26 = vadd.f32 %v314_v25, %v313_v23  ;;  %v301_v27 = vadd.f32 %v300_v24, %v299_v22 }
  0xfe   : > { %v316_v28 = vrot.slane %v315_v26, 2  ;;  %v302_v29 = vrot.slane %v301_v27, 1 }
 0x100   : > { %v317_v30 = vadd.f32 %v316_v28, %v315_v26  ;;  %v303_v31 = vadd.f32 %v302_v29, %v301_v27 }
 0x102   : > { %611 = vpush %v303_v31  ;;  %v318_v32 = vrot.slane %v317_v30, 1 }
 0x104   : > { %v319_v33 = vadd.f32 %v318_v32, %v317_v30 }
 0x106   : > { %613 = vpush %v319_v33 }
 0x133   : > { %s612_s24 = spop %611  ;;  %324 = sbr.rel (%p587_p8) target bundleno = 637 (0x27d), region = 48 }
 0x137   : > { %s614_s10 = spop %613 }
 0x138   : > { %329 = vxpose.xlu0.b32.start [1/2] (short) (narrow) %v282_v0, 16  ;;  %604 = vmatprep.subr.mxu0 %v283_v1 }
 0x139   : > { %605 = vmatpush3.msra.mxu0 %v283_v1 }
 0x13a   : > { %606 = vmatprep.subr.mxu0 %v282_v0 }
 0x13b   : > { %607 = vmatpush3.msra.mxu0 %v282_v0 }
 0x13c   : > { %330 = vxpose.xlu0.b32.end [2/2] (short) (narrow) %v283_v1, 16 }
 0x1b4   : > { %v345_v34 = vpop.trf.xlu0 }
 0x1b5   : > { %608 = vmatprep.mubr.msk.f32.mxu0 %vm292_vm0, %v345_v34 }
 0x1b8   : > { %v346_v35 = vpop.trf.xlu0 }
 0x1b9   : > { %609 = vmatmul.mubr.msk.f32.vlgmr.msra.gmra.mxu0 %vm292_vm0, %v346_v35 }
 0x279   : > { %v610_v36 = vpop.f32.mrf.mxu0 }
 0x27a   : > { %443 = vst.msk [vmem:[%s1078_s4 + $0x8] sm:$0xff] %vm292_vm0, %v610_v36 }
 0x27b   : > { %v433_v37 = vpop.f32.mrf.mxu0 }
 0x27c   : > { %442 = vst.msk [vmem:[%s1078_s4] sm:$0xff] %vm292_vm0, %v433_v37 }
 0x27d PF: > { %s444_s27 = sld [smem:[#allocation2]]  ;;  %s471_s22 = sshll.u32 %s1077_s3, 4  ;;  %s472_s22 = int_to_ptr.vmem [resolvable:$true] %s471_s22 }
 0x27e   : > { %s590_s29 = sld [smem:[#allocation2 + $0x1]]  ;;  %p639_p4 = scmp.eq.s32.totalorder %s872_s19, 1 }
 0x27f   : > { %s763_s13 = scalar_lea.vmem %s472_s22, 16  ;;  %p770_p13 = scmp.lt.s32.totalorder %s472_s22, %s472_s22 }
 0x280   : > { %p764_p5 = scmp.ne.s32.totalorder %s472_s22, %s763_s13  ;;  %p771_p9 = scmp.lt.s32.totalorder %s763_s13, %s763_s13 }
 0x282   : > { %p765_p6 = pnand %p764_p5, %p639_p4  ;;  %p772_p7 = por %p771_p9, %p770_p13 }
 0x283   : > { %s445_s8 = sadd.f32 %s612_s24, %s444_s27 }
 0x284   : > { %s449_s11 = sadd.f32 %s614_s10, %s590_s29  ;;  %p766_p11 = pneg %p765_p6 }
 0x285   : > { %447 = sst [smem:[#allocation2]] %s445_s8  ;;  %s457_s6 = smul.f32 0.001953125, %s445_s8 }
 0x286   : > { %451 = sst [smem:[#allocation2 + $0x1]] %s449_s11  ;;  %s461_s30 = smul.f32 1.5258789e-05, %s449_s11 }
 0x287   : > { %622 = sst [smem:[#allocation9]] (%p639_p4), %s457_s6  ;;  %p773_p0 = pnand %p772_p7, %p766_p11 }
 0x288   : > { %623 = sst [smem:[#allocation9 + $0x1]] (%p639_p4), %s461_s30 }
 0x289   : > { %776 = shalt.err (!%p773_p0)
}
 0x28a   : > { %s827_s28 = smov [#allocation9]  }
 0x28b   : > { %625 = dma.smem_to_vmem (%p639_p4), %s827_s28, 16, %s472_s22, [#allocation5]  }
 0x28c   : > { %802 = dma.done.wait (%p639_p4), [#allocation5], 16  }
 0x28d   : > { %804 = vsyncadd (%p639_p4), [#allocation5], 4294967280 }
 0x28e   : > { %485 = sfence }
 0x28f PF: > { %p19_p1 = scmp.ge.s32.totalorder %s875_s20, 4   ;;  %s1091_s15 = smov %s811_s16 }
 0x290   : > { %s1092_s16 = smov %s815_s17  ;;  %s1093_s17 = smov %s885_s23 }
 0x291   : > { %s1094_s18 = smov %s875_s20  ;;  %21 = sbr.rel (!%p19_p1) target bundleno = 6 (0x6), region = 115 }
 0x296   :  { %491 = vsyncpa [#allocation4], 1 }
 0x297   :  { %493 = vsyncpa [#allocation4 + $0x1], 1 }
 0x298   :  { %494 = vsyncpa [#allocation7], 1 }
 0x299   :  { %496 = vsyncpa [#allocation7 + $0x1], 1 }
 0x29a   :  { %497 = vsyncpa [#allocation5], 1 }
 0x29b   :  { %499 = vsyncpa [#allocation5 + $0x1], 1 }

</bundles_post_ra>
